<compile_context>
chip_gen: v7x
topology: tpu7x:2x2x1
jax: 0.10.0
libtpu: 0.0.40
codegen_flags: <defaults>
</compile_context>

<pallas_src>
import functools

import jax
import jax.numpy as jnp
from jax.experimental import pallas as pl
from jax.experimental.pallas import tpu as pltpu

BN_EPS = 1e-5
LN_EPS = 1e-5
LEAKY_SLOPE = 0.01


def _fc_block(h, vecs, w, b):
  """Folded-BatchNorm -> LayerNorm -> LeakyReLU -> (Dropout=id) -> Linear.

  vecs rows: 0 = bn_scale, 1 = bn_shift, 2 = ln_weight, 3 = ln_bias.
  """
  # BatchNorm1d (running stats) folded into a single scale/shift.
  h = h * vecs[0:1, :] + vecs[1:2, :]
  # LayerNorm over the feature axis, one-pass variance.
  mu = jnp.mean(h, axis=-1, keepdims=True)
  var = jnp.maximum(jnp.mean(h * h, axis=-1, keepdims=True) - mu * mu, 0.0)
  h = (h - mu) * jax.lax.rsqrt(var + LN_EPS) * vecs[2:3, :] + vecs[3:4, :]
  # LeakyReLU (negative_slope = 0.01, PyTorch default).
  h = jnp.where(h >= 0, h, LEAKY_SLOPE * h)
  # Dropout(0.5) is identity in eval mode.
  return jnp.dot(h, w, preferred_element_type=jnp.float32) + b


def linkdist_kernel(x_ref, w1_ref, b1_ref,
                    fc1_v_ref, fc1_w_ref, fc1_b_ref,
                    fco_v_ref, fco_w_ref, fco_b_ref,
                    fci_v_ref, fci_w_ref, fci_b_ref,
                    o_ref):
  x = x_ref[...].astype(jnp.float32)

  # mlp.layers[0]: plain Linear(din, hid)
  h = jnp.dot(x, w1_ref[...], preferred_element_type=jnp.float32) + b1_ref[...]

  # mlp.layers[1]: FC(hid, hid)
  h = _fc_block(h, fc1_v_ref[...], fc1_w_ref[...], fc1_b_ref[...])

  # Heads; write both into one lane-dense output tile (out | inf).
  out = _fc_block(h, fco_v_ref[...], fco_w_ref[...], fco_b_ref[...])
  inf = _fc_block(h, fci_v_ref[...], fci_w_ref[...], fci_b_ref[...])
  o_ref[...] = jnp.concatenate([out, inf], axis=-1).astype(o_ref.dtype)


def make_fc_params(key, d_in, d_out):
  """Deterministic parameters for one FC block (eval-mode BatchNorm stats)."""
  ks = jax.random.split(key, 8)
  bn_mean = 0.1 * jax.random.normal(ks[0], (1, d_in), jnp.float32)
  bn_var = 0.5 + jax.random.uniform(ks[1], (1, d_in), jnp.float32)
  bn_w = 1.0 + 0.1 * jax.random.normal(ks[2], (1, d_in), jnp.float32)
  bn_b = 0.1 * jax.random.normal(ks[3], (1, d_in), jnp.float32)
  ln_w = 1.0 + 0.1 * jax.random.normal(ks[4], (1, d_in), jnp.float32)
  ln_b = 0.1 * jax.random.normal(ks[5], (1, d_in), jnp.float32)
  bound = 1.0 / jnp.sqrt(d_in)
  w = jax.random.uniform(ks[6], (d_in, d_out), jnp.float32, -bound, bound)
  b = jax.random.uniform(ks[7], (1, d_out), jnp.float32, -bound, bound)
  return (bn_mean, bn_var, bn_w, bn_b, ln_w, ln_b, w, b)


def init_linkdist_params(key, din, hid, dout):
  k1, k2, k3, k4, k5 = jax.random.split(key, 5)
  bound = 1.0 / jnp.sqrt(din)
  w1 = jax.random.uniform(k1, (din, hid), jnp.float32, -bound, bound)
  b1 = jax.random.uniform(k2, (1, hid), jnp.float32, -bound, bound)
  return {
      "w1": w1,
      "b1": b1,
      "fc1": make_fc_params(k3, hid, hid),   # mlp.layers[1]
      "out": make_fc_params(k4, hid, dout),  # self.out
      "inf": make_fc_params(k5, hid, dout),  # self.inf
  }


def _fold_fc(fc):
  """Fold BN running stats into scale/shift; pack the four (1,d) vectors."""
  bn_mean, bn_var, bn_w, bn_b, ln_w, ln_b, w, b = fc
  bn_scale = bn_w * jax.lax.rsqrt(bn_var + BN_EPS)
  bn_shift = bn_b - bn_mean * bn_scale
  vecs = jnp.concatenate([bn_scale, bn_shift, ln_w, ln_b], axis=0)  # (4, d_in)
  return vecs, w, b


def _round_up(x, m):
  return (x + m - 1) // m * m


@functools.partial(jax.jit, static_argnames=("row_tile",))
def linkdist_forward(x, params, row_tile=256):
  n, din = x.shape
  hid = params["w1"].shape[1]
  dout = params["out"][6].shape[1]

  # Big, MXU-aligned row tile, but never bigger than the (sublane-rounded)
  # batch.  Pad the batch with zero rows to a tile multiple; the padded rows
  # are computed and then sliced away.
  tile = min(row_tile, _round_up(n, 8))
  n_pad = _round_up(n, tile)
  if n_pad != n:
    x = jnp.pad(x, ((0, n_pad - n), (0, 0)))

  fc1 = _fold_fc(params["fc1"])
  fco = _fold_fc(params["out"])
  fci = _fold_fc(params["inf"])
  flat_params = [params["w1"], params["b1"], *fc1, *fco, *fci]

  row_map = lambda i: (i, 0)      # tile over batch rows
  bcast_map = lambda i: (0, 0)    # parameters: same full block every step

  in_specs = [pl.BlockSpec((tile, din), row_map)]
  in_specs += [pl.BlockSpec(p.shape, bcast_map) for p in flat_params]

  out_specs = pl.BlockSpec((tile, 2 * dout), row_map)
  out_shape = jax.ShapeDtypeStruct((n_pad, 2 * dout), jnp.float32)

  flops = 2 * n_pad * (din * hid + hid * hid + 2 * hid * dout)
  transcendentals = 3 * n_pad  # one LN rsqrt per row per FC block
  param_bytes = sum(int(p.size) * p.dtype.itemsize for p in flat_params)
  bytes_accessed = n_pad * (din + 2 * dout) * 4 + param_bytes

  combined = pl.pallas_call(
      linkdist_kernel,
      grid=(n_pad // tile,),
      in_specs=in_specs,
      out_specs=out_specs,
      out_shape=out_shape,
      compiler_params=pltpu.CompilerParams(
          dimension_semantics=("parallel",)),
      cost_estimate=pl.CostEstimate(
          flops=flops,
          transcendentals=transcendentals,
          bytes_accessed=bytes_accessed),
  )(x, *flat_params)

  return combined[:n, :dout], combined[:n, dout:]


# ----------------------- pure-JAX reference (for checking) ------------------
def _ref_fc(h, fc):
  bn_mean, bn_var, bn_w, bn_b, ln_w, ln_b, w, b = fc
  h = (h - bn_mean) * jax.lax.rsqrt(bn_var + BN_EPS) * bn_w + bn_b
  mu = jnp.mean(h, axis=-1, keepdims=True)
  var = jnp.mean((h - mu) ** 2, axis=-1, keepdims=True)
  h = (h - mu) * jax.lax.rsqrt(var + LN_EPS) * ln_w + ln_b
  h = jnp.where(h >= 0, h, LEAKY_SLOPE * h)
  return h @ w + b


def linkdist_reference(x, params):
  h = x @ params["w1"] + params["b1"]
  h = _ref_fc(h, params["fc1"])
  return _ref_fc(h, params["out"]), _ref_fc(h, params["inf"])


if __name__ == "__main__":
  # Small shapes consistent with the module: x is [N, din].
  N, DIN, HID, DOUT = 16, 32, 64, 16

  key = jax.random.PRNGKey(0)
  kx, kp = jax.random.split(key)
  x = jax.random.normal(kx, (N, DIN), jnp.float32)
  params = init_linkdist_params(kp, DIN, HID, DOUT)

  out, inf = linkdist_forward(x, params)
  jax.block_until_ready((out, inf))

  assert out.shape == (N, DOUT) and inf.shape == (N, DOUT)

  ref_out, ref_inf = linkdist_reference(x, params)
  assert jnp.allclose(out, ref_out, rtol=1e-3, atol=1e-3)
  assert jnp.allclose(inf, ref_inf, rtol=1e-3, atol=1e-3)

  print("KERNEL_OK")
</pallas_src>

<mosaic_0001>
module attributes {stable_mosaic.version = 11 : i64} {
  func.func @linkdist_kernel(%arg0: i32, %arg1: memref<16x32xf32, #tpu.memory_space<vmem>>, %arg2: memref<32x64xf32, #tpu.memory_space<vmem>>, %arg3: memref<1x64xf32, #tpu.memory_space<vmem>>, %arg4: memref<4x64xf32, #tpu.memory_space<vmem>>, %arg5: memref<64x64xf32, #tpu.memory_space<vmem>>, %arg6: memref<1x64xf32, #tpu.memory_space<vmem>>, %arg7: memref<4x64xf32, #tpu.memory_space<vmem>>, %arg8: memref<64x16xf32, #tpu.memory_space<vmem>>, %arg9: memref<1x16xf32, #tpu.memory_space<vmem>>, %arg10: memref<4x64xf32, #tpu.memory_space<vmem>>, %arg11: memref<64x16xf32, #tpu.memory_space<vmem>>, %arg12: memref<1x16xf32, #tpu.memory_space<vmem>>, %arg13: memref<16x32xf32, #tpu.memory_space<vmem>>) attributes {dimension_semantics = [#tpu.dimension_semantics<parallel>], iteration_bounds = array<i64: 1>, scalar_prefetch = 0 : i64, scratch_operands = 0 : i64, tpu.core_type = #tpu.core_type<tc>, window_params = [{transform_indices = @transform_0, window_bounds = array<i64: 16, 32>}, {pipeline_mode = #tpu.pipeline_mode<synchronous>, transform_indices = @transform_1, window_bounds = array<i64: 32, 64>}, {pipeline_mode = #tpu.pipeline_mode<synchronous>, transform_indices = @transform_2, window_bounds = array<i64: 1, 64>}, {pipeline_mode = #tpu.pipeline_mode<synchronous>, transform_indices = @transform_3, window_bounds = array<i64: 4, 64>}, {pipeline_mode = #tpu.pipeline_mode<synchronous>, transform_indices = @transform_4, window_bounds = array<i64: 64, 64>}, {pipeline_mode = #tpu.pipeline_mode<synchronous>, transform_indices = @transform_5, window_bounds = array<i64: 1, 64>}, {pipeline_mode = #tpu.pipeline_mode<synchronous>, transform_indices = @transform_6, window_bounds = array<i64: 4, 64>}, {pipeline_mode = #tpu.pipeline_mode<synchronous>, transform_indices = @transform_7, window_bounds = array<i64: 64, 16>}, {pipeline_mode = #tpu.pipeline_mode<synchronous>, transform_indices = @transform_8, window_bounds = array<i64: 1, 16>}, {pipeline_mode = #tpu.pipeline_mode<synchronous>, transform_indices = @transform_9, window_bounds = array<i64: 4, 64>}, {pipeline_mode = #tpu.pipeline_mode<synchronous>, transform_indices = @transform_10, window_bounds = array<i64: 64, 16>}, {pipeline_mode = #tpu.pipeline_mode<synchronous>, transform_indices = @transform_11, window_bounds = array<i64: 1, 16>}, {transform_indices = @transform_12, window_bounds = array<i64: 16, 32>}]} {
    %c0 = arith.constant 0 : index
    %c0_0 = arith.constant 0 : index
    %0 = vector.load %arg1[%c0, %c0_0] : memref<16x32xf32, #tpu.memory_space<vmem>>, vector<16x32xf32>
    %c0_1 = arith.constant 0 : index
    %c0_2 = arith.constant 0 : index
    %1 = vector.load %arg2[%c0_1, %c0_2] : memref<32x64xf32, #tpu.memory_space<vmem>>, vector<32x64xf32>
    %cst = arith.constant dense<0.000000e+00> : vector<16x64xf32>
    %2 = tpu.matmul %0, %1, %cst {dimension_numbers = #tpu.dot_dimension_numbers<[1], [0], [0], [1], [0, 0, 1, 1], [], []>} : vector<16x32xf32>, vector<32x64xf32>, vector<16x64xf32> -> vector<16x64xf32>
    %c0_3 = arith.constant 0 : index
    %c0_4 = arith.constant 0 : index
    %3 = vector.load %arg3[%c0_3, %c0_4] : memref<1x64xf32, #tpu.memory_space<vmem>>, vector<1x64xf32>
    %4 = vector.broadcast %3 : vector<1x64xf32> to vector<16x64xf32>
    %5 = arith.addf %2, %4 : vector<16x64xf32>
    %c0_5 = arith.constant 0 : index
    %c0_6 = arith.constant 0 : index
    %6 = vector.load %arg4[%c0_5, %c0_6] : memref<4x64xf32, #tpu.memory_space<vmem>>, vector<4x64xf32>
    %c0_7 = arith.constant 0 : index
    %c0_8 = arith.constant 0 : index
    %7 = vector.load %arg5[%c0_7, %c0_8] : memref<64x64xf32, #tpu.memory_space<vmem>>, vector<64x64xf32>
    %c0_9 = arith.constant 0 : index
    %c0_10 = arith.constant 0 : index
    %8 = vector.load %arg6[%c0_9, %c0_10] : memref<1x64xf32, #tpu.memory_space<vmem>>, vector<1x64xf32>
    %9 = vector.extract_strided_slice %6 {offsets = [0, 0], sizes = [1, 64], strides = [1, 1]} : vector<4x64xf32> to vector<1x64xf32>
    %10 = vector.broadcast %9 : vector<1x64xf32> to vector<16x64xf32>
    %11 = arith.mulf %5, %10 : vector<16x64xf32>
    %12 = vector.extract_strided_slice %6 {offsets = [1, 0], sizes = [1, 64], strides = [1, 1]} : vector<4x64xf32> to vector<1x64xf32>
    %13 = vector.broadcast %12 : vector<1x64xf32> to vector<16x64xf32>
    %14 = arith.addf %11, %13 : vector<16x64xf32>
    %cst_11 = arith.constant dense<0.000000e+00> : vector<16xf32>
    %15 = vector.multi_reduction <add>, %14, %cst_11 [1] : vector<16x64xf32> to vector<16xf32>
    %16 = vector.shape_cast %15 : vector<16xf32> to vector<16x1xf32>
    %cst_12 = arith.constant 6.400000e+01 : f32
    %17 = vector.broadcast %cst_12 : f32 to vector<16x1xf32>
    %18 = arith.divf %16, %17 : vector<16x1xf32>
    %19 = arith.mulf %14, %14 : vector<16x64xf32>
    %cst_13 = arith.constant dense<0.000000e+00> : vector<16xf32>
    %20 = vector.multi_reduction <add>, %19, %cst_13 [1] : vector<16x64xf32> to vector<16xf32>
    %21 = vector.shape_cast %20 : vector<16xf32> to vector<16x1xf32>
    %cst_14 = arith.constant 6.400000e+01 : f32
    %22 = vector.broadcast %cst_14 : f32 to vector<16x1xf32>
    %23 = arith.divf %21, %22 : vector<16x1xf32>
    %24 = arith.mulf %18, %18 : vector<16x1xf32>
    %25 = arith.subf %23, %24 : vector<16x1xf32>
    %cst_15 = arith.constant 0.000000e+00 : f32
    %26 = vector.broadcast %cst_15 : f32 to vector<16x1xf32>
    %27 = arith.maximumf %25, %26 : vector<16x1xf32>
    %28 = vector.broadcast %18 : vector<16x1xf32> to vector<16x64xf32>
    %29 = arith.subf %14, %28 : vector<16x64xf32>
    %cst_16 = arith.constant 9.99999974E-6 : f32
    %30 = vector.broadcast %cst_16 : f32 to vector<16x1xf32>
    %31 = arith.addf %27, %30 : vector<16x1xf32>
    %32 = math.rsqrt %31 : vector<16x1xf32>
    %33 = vector.broadcast %32 : vector<16x1xf32> to vector<16x64xf32>
    %34 = arith.mulf %29, %33 : vector<16x64xf32>
    %35 = vector.extract_strided_slice %6 {offsets = [2, 0], sizes = [1, 64], strides = [1, 1]} : vector<4x64xf32> to vector<1x64xf32>
    %36 = vector.broadcast %35 : vector<1x64xf32> to vector<16x64xf32>
    %37 = arith.mulf %34, %36 : vector<16x64xf32>
    %38 = vector.extract_strided_slice %6 {offsets = [3, 0], sizes = [1, 64], strides = [1, 1]} : vector<4x64xf32> to vector<1x64xf32>
    %39 = vector.broadcast %38 : vector<1x64xf32> to vector<16x64xf32>
    %40 = arith.addf %37, %39 : vector<16x64xf32>
    %cst_17 = arith.constant 0.000000e+00 : f32
    %41 = vector.broadcast %cst_17 : f32 to vector<16x64xf32>
    %42 = arith.cmpf oge, %40, %41 : vector<16x64xf32>
    %cst_18 = arith.constant 0.00999999977 : f32
    %43 = vector.broadcast %cst_18 : f32 to vector<16x64xf32>
    %44 = arith.mulf %43, %40 : vector<16x64xf32>
    %45 = arith.select %42, %40, %44 : vector<16x64xi1>, vector<16x64xf32>
    %cst_19 = arith.constant dense<0.000000e+00> : vector<16x64xf32>
    %46 = tpu.matmul %45, %7, %cst_19 {dimension_numbers = #tpu.dot_dimension_numbers<[1], [0], [0], [1], [0, 0, 1, 1], [], []>} : vector<16x64xf32>, vector<64x64xf32>, vector<16x64xf32> -> vector<16x64xf32>
    %47 = vector.broadcast %8 : vector<1x64xf32> to vector<16x64xf32>
    %48 = arith.addf %46, %47 : vector<16x64xf32>
    %c0_20 = arith.constant 0 : index
    %c0_21 = arith.constant 0 : index
    %49 = vector.load %arg7[%c0_20, %c0_21] : memref<4x64xf32, #tpu.memory_space<vmem>>, vector<4x64xf32>
    %c0_22 = arith.constant 0 : index
    %c0_23 = arith.constant 0 : index
    %50 = vector.load %arg8[%c0_22, %c0_23] : memref<64x16xf32, #tpu.memory_space<vmem>>, vector<64x16xf32>
    %c0_24 = arith.constant 0 : index
    %c0_25 = arith.constant 0 : index
    %51 = vector.load %arg9[%c0_24, %c0_25] : memref<1x16xf32, #tpu.memory_space<vmem>>, vector<1x16xf32>
    %52 = vector.extract_strided_slice %49 {offsets = [0, 0], sizes = [1, 64], strides = [1, 1]} : vector<4x64xf32> to vector<1x64xf32>
    %53 = vector.broadcast %52 : vector<1x64xf32> to vector<16x64xf32>
    %54 = arith.mulf %48, %53 : vector<16x64xf32>
    %55 = vector.extract_strided_slice %49 {offsets = [1, 0], sizes = [1, 64], strides = [1, 1]} : vector<4x64xf32> to vector<1x64xf32>
    %56 = vector.broadcast %55 : vector<1x64xf32> to vector<16x64xf32>
    %57 = arith.addf %54, %56 : vector<16x64xf32>
    %cst_26 = arith.constant dense<0.000000e+00> : vector<16xf32>
    %58 = vector.multi_reduction <add>, %57, %cst_26 [1] : vector<16x64xf32> to vector<16xf32>
    %59 = vector.shape_cast %58 : vector<16xf32> to vector<16x1xf32>
    %cst_27 = arith.constant 6.400000e+01 : f32
    %60 = vector.broadcast %cst_27 : f32 to vector<16x1xf32>
    %61 = arith.divf %59, %60 : vector<16x1xf32>
    %62 = arith.mulf %57, %57 : vector<16x64xf32>
    %cst_28 = arith.constant dense<0.000000e+00> : vector<16xf32>
    %63 = vector.multi_reduction <add>, %62, %cst_28 [1] : vector<16x64xf32> to vector<16xf32>
    %64 = vector.shape_cast %63 : vector<16xf32> to vector<16x1xf32>
    %cst_29 = arith.constant 6.400000e+01 : f32
    %65 = vector.broadcast %cst_29 : f32 to vector<16x1xf32>
    %66 = arith.divf %64, %65 : vector<16x1xf32>
    %67 = arith.mulf %61, %61 : vector<16x1xf32>
    %68 = arith.subf %66, %67 : vector<16x1xf32>
    %cst_30 = arith.constant 0.000000e+00 : f32
    %69 = vector.broadcast %cst_30 : f32 to vector<16x1xf32>
    %70 = arith.maximumf %68, %69 : vector<16x1xf32>
    %71 = vector.broadcast %61 : vector<16x1xf32> to vector<16x64xf32>
    %72 = arith.subf %57, %71 : vector<16x64xf32>
    %cst_31 = arith.constant 9.99999974E-6 : f32
    %73 = vector.broadcast %cst_31 : f32 to vector<16x1xf32>
    %74 = arith.addf %70, %73 : vector<16x1xf32>
    %75 = math.rsqrt %74 : vector<16x1xf32>
    %76 = vector.broadcast %75 : vector<16x1xf32> to vector<16x64xf32>
    %77 = arith.mulf %72, %76 : vector<16x64xf32>
    %78 = vector.extract_strided_slice %49 {offsets = [2, 0], sizes = [1, 64], strides = [1, 1]} : vector<4x64xf32> to vector<1x64xf32>
    %79 = vector.broadcast %78 : vector<1x64xf32> to vector<16x64xf32>
    %80 = arith.mulf %77, %79 : vector<16x64xf32>
    %81 = vector.extract_strided_slice %49 {offsets = [3, 0], sizes = [1, 64], strides = [1, 1]} : vector<4x64xf32> to vector<1x64xf32>
    %82 = vector.broadcast %81 : vector<1x64xf32> to vector<16x64xf32>
    %83 = arith.addf %80, %82 : vector<16x64xf32>
    %cst_32 = arith.constant 0.000000e+00 : f32
    %84 = vector.broadcast %cst_32 : f32 to vector<16x64xf32>
    %85 = arith.cmpf oge, %83, %84 : vector<16x64xf32>
    %cst_33 = arith.constant 0.00999999977 : f32
    %86 = vector.broadcast %cst_33 : f32 to vector<16x64xf32>
    %87 = arith.mulf %86, %83 : vector<16x64xf32>
    %88 = arith.select %85, %83, %87 : vector<16x64xi1>, vector<16x64xf32>
    %cst_34 = arith.constant dense<0.000000e+00> : vector<16x16xf32>
    %89 = tpu.matmul %88, %50, %cst_34 {dimension_numbers = #tpu.dot_dimension_numbers<[1], [0], [0], [1], [0, 0, 1, 1], [], []>} : vector<16x64xf32>, vector<64x16xf32>, vector<16x16xf32> -> vector<16x16xf32>
    %90 = vector.broadcast %51 : vector<1x16xf32> to vector<16x16xf32>
    %91 = arith.addf %89, %90 : vector<16x16xf32>
    %c0_35 = arith.constant 0 : index
    %c0_36 = arith.constant 0 : index
    %92 = vector.load %arg10[%c0_35, %c0_36] : memref<4x64xf32, #tpu.memory_space<vmem>>, vector<4x64xf32>
    %c0_37 = arith.constant 0 : index
    %c0_38 = arith.constant 0 : index
    %93 = vector.load %arg11[%c0_37, %c0_38] : memref<64x16xf32, #tpu.memory_space<vmem>>, vector<64x16xf32>
    %c0_39 = arith.constant 0 : index
    %c0_40 = arith.constant 0 : index
    %94 = vector.load %arg12[%c0_39, %c0_40] : memref<1x16xf32, #tpu.memory_space<vmem>>, vector<1x16xf32>
    %95 = vector.extract_strided_slice %92 {offsets = [0, 0], sizes = [1, 64], strides = [1, 1]} : vector<4x64xf32> to vector<1x64xf32>
    %96 = vector.broadcast %95 : vector<1x64xf32> to vector<16x64xf32>
    %97 = arith.mulf %48, %96 : vector<16x64xf32>
    %98 = vector.extract_strided_slice %92 {offsets = [1, 0], sizes = [1, 64], strides = [1, 1]} : vector<4x64xf32> to vector<1x64xf32>
    %99 = vector.broadcast %98 : vector<1x64xf32> to vector<16x64xf32>
    %100 = arith.addf %97, %99 : vector<16x64xf32>
    %cst_41 = arith.constant dense<0.000000e+00> : vector<16xf32>
    %101 = vector.multi_reduction <add>, %100, %cst_41 [1] : vector<16x64xf32> to vector<16xf32>
    %102 = vector.shape_cast %101 : vector<16xf32> to vector<16x1xf32>
    %cst_42 = arith.constant 6.400000e+01 : f32
    %103 = vector.broadcast %cst_42 : f32 to vector<16x1xf32>
    %104 = arith.divf %102, %103 : vector<16x1xf32>
    %105 = arith.mulf %100, %100 : vector<16x64xf32>
    %cst_43 = arith.constant dense<0.000000e+00> : vector<16xf32>
    %106 = vector.multi_reduction <add>, %105, %cst_43 [1] : vector<16x64xf32> to vector<16xf32>
    %107 = vector.shape_cast %106 : vector<16xf32> to vector<16x1xf32>
    %cst_44 = arith.constant 6.400000e+01 : f32
    %108 = vector.broadcast %cst_44 : f32 to vector<16x1xf32>
    %109 = arith.divf %107, %108 : vector<16x1xf32>
    %110 = arith.mulf %104, %104 : vector<16x1xf32>
    %111 = arith.subf %109, %110 : vector<16x1xf32>
    %cst_45 = arith.constant 0.000000e+00 : f32
    %112 = vector.broadcast %cst_45 : f32 to vector<16x1xf32>
    %113 = arith.maximumf %111, %112 : vector<16x1xf32>
    %114 = vector.broadcast %104 : vector<16x1xf32> to vector<16x64xf32>
    %115 = arith.subf %100, %114 : vector<16x64xf32>
    %cst_46 = arith.constant 9.99999974E-6 : f32
    %116 = vector.broadcast %cst_46 : f32 to vector<16x1xf32>
    %117 = arith.addf %113, %116 : vector<16x1xf32>
    %118 = math.rsqrt %117 : vector<16x1xf32>
    %119 = vector.broadcast %118 : vector<16x1xf32> to vector<16x64xf32>
    %120 = arith.mulf %115, %119 : vector<16x64xf32>
    %121 = vector.extract_strided_slice %92 {offsets = [2, 0], sizes = [1, 64], strides = [1, 1]} : vector<4x64xf32> to vector<1x64xf32>
    %122 = vector.broadcast %121 : vector<1x64xf32> to vector<16x64xf32>
    %123 = arith.mulf %120, %122 : vector<16x64xf32>
    %124 = vector.extract_strided_slice %92 {offsets = [3, 0], sizes = [1, 64], strides = [1, 1]} : vector<4x64xf32> to vector<1x64xf32>
    %125 = vector.broadcast %124 : vector<1x64xf32> to vector<16x64xf32>
    %126 = arith.addf %123, %125 : vector<16x64xf32>
    %cst_47 = arith.constant 0.000000e+00 : f32
    %127 = vector.broadcast %cst_47 : f32 to vector<16x64xf32>
    %128 = arith.cmpf oge, %126, %127 : vector<16x64xf32>
    %cst_48 = arith.constant 0.00999999977 : f32
    %129 = vector.broadcast %cst_48 : f32 to vector<16x64xf32>
    %130 = arith.mulf %129, %126 : vector<16x64xf32>
    %131 = arith.select %128, %126, %130 : vector<16x64xi1>, vector<16x64xf32>
    %cst_49 = arith.constant dense<0.000000e+00> : vector<16x16xf32>
    %132 = tpu.matmul %131, %93, %cst_49 {dimension_numbers = #tpu.dot_dimension_numbers<[1], [0], [0], [1], [0, 0, 1, 1], [], []>} : vector<16x64xf32>, vector<64x16xf32>, vector<16x16xf32> -> vector<16x16xf32>
    %133 = vector.broadcast %94 : vector<1x16xf32> to vector<16x16xf32>
    %134 = arith.addf %132, %133 : vector<16x16xf32>
    %135 = tpu.concatenate %91, %134 in 1 : vector<16x16xf32>, vector<16x16xf32> -> vector<16x32xf32>
    %c0_50 = arith.constant 0 : index
    %c0_51 = arith.constant 0 : index
    %136 = vector.load %arg13[%c0_50, %c0_51] : memref<16x32xf32, #tpu.memory_space<vmem>>, vector<16x32xf32>
    tpu.vector_store %arg13[%c0_50, %c0_51], %135 {strides = array<i32>} : memref<16x32xf32, #tpu.memory_space<vmem>>, vector<16x32xf32>,
    return
  }
  func.func @transform_0(%arg0: i32) -> (i32, i32) {
    %c0_i32 = arith.constant 0 : i32
    %c0_i32_0 = arith.constant 0 : i32
    return %arg0, %c0_i32 : i32, i32
  }
  func.func @transform_1(%arg0: i32) -> (i32, i32) {
    %c0_i32 = arith.constant 0 : i32
    %c0_i32_0 = arith.constant 0 : i32
    %c0_i32_1 = arith.constant 0 : i32
    return %c0_i32, %c0_i32_0 : i32, i32
  }
  func.func @transform_2(%arg0: i32) -> (i32, i32) {
    %c0_i32 = arith.constant 0 : i32
    %c0_i32_0 = arith.constant 0 : i32
    %c0_i32_1 = arith.constant 0 : i32
    return %c0_i32, %c0_i32_0 : i32, i32
  }
  func.func @transform_3(%arg0: i32) -> (i32, i32) {
    %c0_i32 = arith.constant 0 : i32
    %c0_i32_0 = arith.constant 0 : i32
    %c0_i32_1 = arith.constant 0 : i32
    return %c0_i32, %c0_i32_0 : i32, i32
  }
  func.func @transform_4(%arg0: i32) -> (i32, i32) {
    %c0_i32 = arith.constant 0 : i32
    %c0_i32_0 = arith.constant 0 : i32
    %c0_i32_1 = arith.constant 0 : i32
    return %c0_i32, %c0_i32_0 : i32, i32
  }
  func.func @transform_5(%arg0: i32) -> (i32, i32) {
    %c0_i32 = arith.constant 0 : i32
    %c0_i32_0 = arith.constant 0 : i32
    %c0_i32_1 = arith.constant 0 : i32
    return %c0_i32, %c0_i32_0 : i32, i32
  }
  func.func @transform_6(%arg0: i32) -> (i32, i32) {
    %c0_i32 = arith.constant 0 : i32
    %c0_i32_0 = arith.constant 0 : i32
    %c0_i32_1 = arith.constant 0 : i32
    return %c0_i32, %c0_i32_0 : i32, i32
  }
  func.func @transform_7(%arg0: i32) -> (i32, i32) {
    %c0_i32 = arith.constant 0 : i32
    %c0_i32_0 = arith.constant 0 : i32
    %c0_i32_1 = arith.constant 0 : i32
    return %c0_i32, %c0_i32_0 : i32, i32
  }
  func.func @transform_8(%arg0: i32) -> (i32, i32) {
    %c0_i32 = arith.constant 0 : i32
    %c0_i32_0 = arith.constant 0 : i32
    %c0_i32_1 = arith.constant 0 : i32
    return %c0_i32, %c0_i32_0 : i32, i32
  }
  func.func @transform_9(%arg0: i32) -> (i32, i32) {
    %c0_i32 = arith.constant 0 : i32
    %c0_i32_0 = arith.constant 0 : i32
    %c0_i32_1 = arith.constant 0 : i32
    return %c0_i32, %c0_i32_0 : i32, i32
  }
  func.func @transform_10(%arg0: i32) -> (i32, i32) {
    %c0_i32 = arith.constant 0 : i32
    %c0_i32_0 = arith.constant 0 : i32
    %c0_i32_1 = arith.constant 0 : i32
    return %c0_i32, %c0_i32_0 : i32, i32
  }
  func.func @transform_11(%arg0: i32) -> (i32, i32) {
    %c0_i32 = arith.constant 0 : i32
    %c0_i32_0 = arith.constant 0 : i32
    %c0_i32_1 = arith.constant 0 : i32
    return %c0_i32, %c0_i32_0 : i32, i32
  }
  func.func @transform_12(%arg0: i32) -> (i32, i32) {
    %c0_i32 = arith.constant 0 : i32
    %c0_i32_0 = arith.constant 0 : i32
    return %arg0, %c0_i32 : i32, i32
  }
}

</mosaic_0001>

<bundles_post_ra>
// kernel: linkdist_forward.1
= control target key start
LH: loop header
LB: loop body
LE: loop exit
PB: predicated region body
PF: predicated region fallthrough
CT: control target
= control target key end

     0   :  { %vm54_vm0 = vcmask 261120   ;;  %v146_v8 = vlaneseq  ;;  %vm158_vm1 = vcmask 523264   ;;  %vm623_vm8 = vcmask 130048   ;;  %s1096_s1 = inlined_call_operand.vmem [shape: f32[32,64], index: 1, kind: input, shape index: {}]   ;;  %s1097_s0 = inlined_call_operand.vmem [shape: f32[16,32], index: 0, kind: input, shape index: {}]   ;;  %s1098_s3 = inlined_call_operand.vmem [shape: f32[4,64], index: 3, kind: input, shape index: {}]   ;;  %s1099_s2 = inlined_call_operand.vmem [shape: f32[1,64], index: 2, kind: input, shape index: {}]   ;;  %s1100_s4 = inlined_call_operand.vmem [shape: f32[64,64], index: 4, kind: input, shape index: {}]   ;;  %s1101_s9 = inlined_call_operand.vmem [shape: f32[4,64], index: 9, kind: input, shape index: {}]   ;;  %s1102_s5 = inlined_call_operand.vmem [shape: f32[1,64], index: 5, kind: input, shape index: {}]   ;;  %s1103_s6 = inlined_call_operand.vmem [shape: f32[4,64], index: 6, kind: input, shape index: {}]   ;;  %s1104_s10 = inlined_call_operand.vmem [shape: f32[64,16], index: 10, kind: input, shape index: {}]   ;;  %s1105_s7 = inlined_call_operand.vmem [shape: f32[64,16], index: 7, kind: input, shape index: {}]   ;;  %s1106_s11 = inlined_call_operand.vmem [shape: f32[1,16], index: 11, kind: input, shape index: {}]   ;;  %s1107_s8 = inlined_call_operand.vmem [shape: f32[1,16], index: 8, kind: input, shape index: {}]   ;;  %s1108_s12 = inlined_call_operand.vmem [shape: f32[16,32], index: 12, kind: output, shape index: {}]  }
   0x1   :  { %v43_v0 = vld [vmem:[%s1096_s1] sm:$0xff]  ;;  %v44_v1 = vld [vmem:[%s1096_s1 + $0x8] sm:$0xff]  ;;  %v45_v2 = vld [vmem:[%s1096_s1 + $0x10] sm:$0xff] }
   0x2   :  { %v748_v3 = vpack.c.bf16 %v44_v1, %v43_v0  ;;  %v46_v4 = vld [vmem:[%s1096_s1 + $0x18] sm:$0xff]  ;;  %v41_v5 = vld [vmem:[%s1097_s0] sm:$0xff]  ;;  %v42_v7 = vld [vmem:[%s1097_s0 + $0x8] sm:$0xff]  ;;  %v903_v9 = vshrl.u32 %v146_v8, 7 }
   0x3   :  { %v752_v6 = vpack.c.bf16 %v46_v4, %v45_v2  ;;  %688 = vmatprep.mubr.msk.f32.mxu0 %vm54_vm0, %v41_v5  ;;  %v911_v11 = vld [vmem:[%s1098_s3] sm:$0xf]  ;;  %v138_v31 = vld [vmem:[%s1100_s4 + $0x8] sm:$0xff]  ;;  %v139_v32 = vld [vmem:[%s1100_s4 + $0x10] sm:$0xff]  ;;  %s817_s3 = smov 16  }
   0x4   :  { %749 = vmatprep.subr.bf16.mxu0 %v748_v3  ;;  %v906_v10 = vsub.s32 0, %v903_v9  ;;  %v632_v12 = vld [vmem:[%s1099_s2] ss:$0 sm:$0xff]  ;;  %v917_v13 = vsub.s32 1, %v903_v9  ;;  %v140_v34 = vld [vmem:[%s1100_s4 + $0x18] sm:$0xff]  ;;  %v142_v37 = vld [vmem:[%s1100_s4 + $0x28] sm:$0xff] }
   0x5   :  { %751 = vmatpush3.bf16.msra.mxu0 %v748_v3  ;;  %v137_v30 = vld [vmem:[%s1100_s4] sm:$0xff]  ;;  %v760_v35 = vpack.c.bf16 %v140_v34, %v139_v32  ;;  %v143_v39 = vld [vmem:[%s1100_s4 + $0x30] sm:$0xff]  ;;  %v144_v40 = vld [vmem:[%s1100_s4 + $0x38] sm:$0xff]  ;;  %v957_v58 = vsub.s32 2, %v903_v9  ;;  %v960_v59 = vsub.s32 3, %v903_v9 }
   0x6   :  { %753 = vmatprep.subr.bf16.mxu0 %v752_v6  ;;  %v149_v14 = vrot.slane %v911_v11, %v906_v10  ;;  %v155_v18 = vrot.slane %v911_v11, %v917_v13  ;;  %v756_v33 = vpack.c.bf16 %v138_v31, %v137_v30  ;;  %v141_v36 = vld [vmem:[%s1100_s4 + $0x20] sm:$0xff]  ;;  %v768_v41 = vpack.c.bf16 %v144_v40, %v143_v39 }
   0x7   :  { %v764_v38 = vpack.c.bf16 %v142_v37, %v141_v36  ;;  %v195_v61 = vrot.slane %v911_v11, %v957_v58  ;;  %v201_v0 = vrot.slane %v911_v11, %v960_v59  ;;  %v972_v11 = vld [vmem:[%s1101_s9] sm:$0xf] }
   0x8   :  { %757 = vmatprep.subr.bf16.mxu1 %v756_v33 }
   0x9   :  { %755 = vmatpush3.bf16.msra.mxu0 %v752_v6  ;;  %759 = vmatpush3.bf16.msra.mxu1 %v756_v33 }
   0xa   :  { %761 = vmatprep.subr.bf16.mxu1 %v760_v35 }
   0xc   :  { %689 = vmatmul.mubr.msk.f32.vlgmr.msra.gmra.mrb[0].mxu0 %vm54_vm0, %v42_v7 }
   0xd   :  { %763 = vmatpush3.bf16.msra.mxu1 %v760_v35 }
   0xe   :  { %765 = vmatprep.subr.bf16.mxu1 %v764_v38 }
  0x11   :  { %767 = vmatpush3.bf16.msra.mxu1 %v764_v38 }
  0x12   :  { %769 = vmatprep.subr.bf16.mxu1 %v768_v41 }
  0x15   :  { %771 = vmatpush3.bf16.msra.mxu1 %v768_v41 }
  0xdf   :  { %v690_v15 = vpop.f32.mrb[0].mxu0 }
  0xe0   :  { %v133_v16 = vadd.f32 %v690_v15, %v632_v12  ;;  %v127_v17 = vpop.f32.mrb[1].mxu0  ;;  %v635_v15 = vld [vmem:[%s1102_s5] ss:$0 sm:$0xff] }
  0xe1   :  { %v128_v19 = vadd.f32 %v632_v12, %v127_v17 }
  0xe2   :  { %v151_v20 = vmul.f32 %v149_v14, %v133_v16  ;;  %v469_v16 = vrot.slane %v972_v11, %v906_v10 }
  0xe3   :  { %v150_v21 = vmul.f32 %v149_v14, %v128_v19 }
  0xe4   :  { %v923_v22 = vadd.f32 %v155_v18, %v151_v20  ;;  %v475_v20 = vrot.slane %v972_v11, %v917_v13 }
  0xe5   :  { %v156_v23 = vadd.f32 %v155_v18, %v150_v21  ;;  %v982_v18 = vld [vmem:[%s1103_s6] sm:$0xf] }
  0xe6   :  { %v169_v27 = vmul.f32 %v923_v22, %v923_v22  ;;  %v162_v28 = vsel %vm158_vm1, %v923_v22, 0.0 }
  0xe7   :  { %v159_v24 = vsel %vm158_vm1, %v156_v23, 0.0  ;;  %v168_v25 = vmul.f32 %v156_v23, %v156_v23 }
  0xe8   :  { %160 = vadd.xlane.f32.xlu0 %v159_v24  ;;  %v173_v29 = vsel %vm158_vm1, %v169_v27, 0.0 }
  0xe9   :  { %v170_v26 = vsel %vm158_vm1, %v168_v25, 0.0 }
  0xea   :  { %171 = vadd.xlane.f32.xlu1 %v170_v26 }
  0xec   :  { %163 = vadd.xlane.f32.xlu0 %v162_v28 }
  0xee   :  { %174 = vadd.xlane.f32.xlu1 %v173_v29  ;;  %v316_v29 = vrot.slane %v982_v18, %v917_v13 }
 0x175   :  { %v161_v42 = vpop.xlane.xlu0 %160 }
 0x176   :  { %v166_v43 = vmul.f32 0.015625, %v161_v42 }
 0x177   :  { %v172_v44 = vpop.xlane.xlu1 %171 }
 0x178   :  { %v178_v45 = vmul.f32 %v166_v43, %v166_v43  ;;  %v176_v46 = vmul.f32 0.015625, %v172_v44  ;;  %v184_v60 = vsub.f32 %v156_v23, %v166_v43  ;;  %v310_v23 = vrot.slane %v982_v18, %v906_v10  ;;  %v457_v43 = vld [vmem:[%s1104_s10] sm:$0xff]  ;;  %v458_v44 = vld [vmem:[%s1104_s10 + $0x8] sm:$0xff] }
 0x179   :  { %v164_v47 = vpop.xlane.xlu0 %163 }
 0x17a   :  { %v180_v48 = vsub.f32 %v176_v46, %v178_v45  ;;  %v167_v49 = vmul.f32 0.015625, %v164_v47  ;;  %v788_v45 = vpack.c.bf16 %v458_v44, %v457_v43  ;;  %v459_v46 = vld [vmem:[%s1104_s10 + $0x10] sm:$0xff]  ;;  %v460_v47 = vld [vmem:[%s1104_s10 + $0x18] sm:$0xff]  ;;  %v513_v44 = vrot.slane %v972_v11, %v957_v58 }
 0x17b   :  { %v175_v50 = vpop.xlane.xlu1 %174 }
 0x17c   :  { %v182_v51 = vmax.f32 %v180_v48, 0.0  ;;  %v179_v52 = vmul.f32 %v167_v49, %v167_v49  ;;  %v177_v53 = vmul.f32 0.015625, %v175_v50  ;;  %v185_v1 = vsub.f32 %v923_v22, %v167_v49  ;;  %789 = vmatprep.subr.bf16.mxu1 %v788_v45  ;;  %v461_v49 = vld [vmem:[%s1104_s10 + $0x20] sm:$0xff]  ;;  %v462_v50 = vld [vmem:[%s1104_s10 + $0x28] sm:$0xff] }
 0x17d   :  { %v792_v48 = vpack.c.bf16 %v460_v47, %v459_v46 }
 0x17e   :  { %v186_v54 = vadd.f32 1e-05, %v182_v51  ;;  %v181_v55 = vsub.f32 %v177_v53, %v179_v52  ;;  %v463_v51 = vld [vmem:[%s1104_s10 + $0x30] sm:$0xff]  ;;  %v298_v52 = vld [vmem:[%s1105_s7] sm:$0xff]  ;;  %v299_v53 = vld [vmem:[%s1105_s7 + $0x8] sm:$0xff] }
 0x180   :  { %805 = vrsqrt.f32 %v186_v54  ;;  %v183_v56 = vmax.f32 %v181_v55, 0.0  ;;  %v796_v54 = vpack.c.bf16 %v462_v50, %v461_v49  ;;  %v300_v55 = vld [vmem:[%s1105_s7 + $0x10] sm:$0xff] }
 0x182   :  { %v187_v57 = vadd.f32 1e-05, %v183_v56  ;;  %v772_v56 = vpack.c.bf16 %v299_v53, %v298_v52 }
 0x184   :  { %807 = vrsqrt.f32 %v187_v57  ;;  %v301_v57 = vld [vmem:[%s1105_s7 + $0x18] sm:$0xff]  ;;  %773 = vmatprep.subr.bf16.mxu0 %v772_v56 }
 0x185   :  { %775 = vmatpush3.bf16.msra.mxu0 %v772_v56  ;;  %v354_v56 = vrot.slane %v982_v18, %v957_v58 }
 0x18a   :  { %v806_v62 = vpop.eup %805 }
 0x18b   :  { %v190_v63 = vmul.f32 %v806_v62, %v184_v60  ;;  %v464_v60 = vld [vmem:[%s1104_s10 + $0x38] sm:$0xff] }
 0x18c   :  { %v800_v62 = vpack.c.bf16 %v464_v60, %v463_v51 }
 0x18d   :  { %v196_v2 = vmul.f32 %v195_v61, %v190_v63  ;;  %v302_v63 = vld [vmem:[%s1105_s7 + $0x20] sm:$0xff] }
 0x18e   :  { %v808_v3 = vpop.eup %807 }
 0x18f   :  { %v202_v4 = vadd.f32 %v201_v0, %v196_v2  ;;  %v191_v5 = vmul.f32 %v808_v3, %v185_v1  ;;  %v304_v2 = vld [vmem:[%s1105_s7 + $0x30] sm:$0xff]  ;;  %v305_v3 = vld [vmem:[%s1105_s7 + $0x38] sm:$0xff] }
 0x191   :  { %vm204_vm2 = vcmp.ge.f32.partialorder %v202_v4, 0.0  ;;  %v206_v6 = vmul.f32 0.01, %v202_v4  ;;  %v197_v7 = vmul.f32 %v195_v61, %v191_v5  ;;  %v776_v61 = vpack.c.bf16 %v301_v57, %v300_v55 }
 0x193   :  { %v208_v8 = vsel %vm204_vm2, %v202_v4, %v206_v6  ;;  %v203_v9 = vadd.f32 %v201_v0, %v197_v7  ;;  %777 = vmatprep.subr.bf16.mxu0 %v776_v61  ;;  %v303_v0 = vld [vmem:[%s1105_s7 + $0x28] sm:$0xff]  ;;  %v784_v4 = vpack.c.bf16 %v305_v3, %v304_v2 }
 0x194   :  { %707 = vmatprep.mubr.msk.f32.mxu1 %vm158_vm1, %v208_v8  ;;  %779 = vmatpush3.bf16.msra.mxu0 %v776_v61  ;;  %v780_v1 = vpack.c.bf16 %v303_v0, %v302_v63 }
 0x195   :  { %vm205_vm3 = vcmp.ge.f32.partialorder %v203_v9, 0.0  ;;  %v207_v12 = vmul.f32 0.01, %v203_v9 }
 0x196   :  { %781 = vmatprep.subr.bf16.mxu0 %v780_v1 }
 0x197   :  { %v209_v14 = vsel %vm205_vm3, %v203_v9, %v207_v12 }
 0x198   :  { %708 = vmatmul.mubr.msk.f32.vlgmr.msra.gmra.mrb[0].mxu1 %vm158_vm1, %v209_v14  ;;  %783 = vmatpush3.bf16.msra.mxu0 %v780_v1 }
 0x199   :  { %791 = vmatpush3.bf16.msra.mxu1 %v788_v45  ;;  %785 = vmatprep.subr.bf16.mxu0 %v784_v4 }
 0x19a   :  { %793 = vmatprep.subr.bf16.mxu1 %v792_v48 }
 0x19c   :  { %787 = vmatpush3.bf16.msra.mxu0 %v784_v4 }
 0x19d   :  { %795 = vmatpush3.bf16.msra.mxu1 %v792_v48  ;;  %v519_v48 = vrot.slane %v972_v11, %v960_v59  ;;  %v360_v11 = vrot.slane %v982_v18, %v960_v59  ;;  %v641_v18 = vld [vmem:[%s1106_s11] ss:$0 sm:$0xff] }
 0x19e   :  { %797 = vmatprep.subr.bf16.mxu1 %v796_v54 }
 0x1a1   :  { %799 = vmatpush3.bf16.msra.mxu1 %v796_v54 }
 0x1a2   :  { %801 = vmatprep.subr.bf16.mxu1 %v800_v62 }
 0x1a5   :  { %803 = vmatpush3.bf16.msra.mxu1 %v800_v62 }
 0x26b   :  { %v709_v17 = vpop.f32.mrb[0].mxu1 }
 0x26c   :  { %v294_v19 = vadd.f32 %v709_v17, %v635_v15  ;;  %v288_v21 = vpop.f32.mrb[1].mxu1 }
 0x26d   :  { %v289_v22 = vadd.f32 %v635_v15, %v288_v21 }
 0x26e   :  { %v471_v24 = vmul.f32 %v469_v16, %v294_v19  ;;  %v312_v28 = vmul.f32 %v310_v23, %v294_v19 }
 0x26f   :  { %v470_v25 = vmul.f32 %v469_v16, %v289_v22  ;;  %v311_v32 = vmul.f32 %v310_v23, %v289_v22 }
 0x270   :  { %v988_v26 = vadd.f32 %v475_v20, %v471_v24  ;;  %v1002_v34 = vadd.f32 %v316_v29, %v312_v28 }
 0x271   :  { %v990_v27 = vadd.f32 %v475_v20, %v470_v25  ;;  %v1005_v13 = vadd.f32 %v316_v29, %v311_v32 }
 0x272   :  { %v481_v30 = vsel %vm158_vm1, %v988_v26, 0.0  ;;  %v487_v31 = vmul.f32 %v988_v26, %v988_v26  ;;  %v322_v37 = vsel %vm158_vm1, %v1002_v34, 0.0  ;;  %v328_v38 = vmul.f32 %v1002_v34, %v1002_v34 }
 0x273   :  { %482 = vadd.xlane.f32.xlu1 %v481_v30  ;;  %v478_v10 = vsel %vm158_vm1, %v990_v27, 0.0  ;;  %v486_v33 = vmul.f32 %v990_v27, %v990_v27  ;;  %v319_v39 = vsel %vm158_vm1, %v1005_v13, 0.0  ;;  %v327_v40 = vmul.f32 %v1005_v13, %v1005_v13 }
 0x274   :  { %479 = vadd.xlane.f32.xlu0 %v478_v10  ;;  %v491_v35 = vsel %vm158_vm1, %v487_v31, 0.0  ;;  %v332_v41 = vsel %vm158_vm1, %v328_v38, 0.0 }
 0x275   :  { %v488_v36 = vsel %vm158_vm1, %v486_v33, 0.0  ;;  %v329_v42 = vsel %vm158_vm1, %v327_v40, 0.0 }
 0x277   :  { %492 = vadd.xlane.f32.xlu1 %v491_v35 }
 0x278   :  { %489 = vadd.xlane.f32.xlu0 %v488_v36 }
 0x27b   :  { %323 = vadd.xlane.f32.xlu1 %v322_v37 }
 0x27c   :  { %320 = vadd.xlane.f32.xlu0 %v319_v39 }
 0x27f   :  { %333 = vadd.xlane.f32.xlu1 %v332_v41 }
 0x280   :  { %330 = vadd.xlane.f32.xlu0 %v329_v42 }
 0x300   :  { %v483_v5 = vpop.xlane.xlu1 %482 }
 0x301   :  { %v485_v6 = vmul.f32 0.015625, %v483_v5  ;;  %v480_v7 = vpop.xlane.xlu0 %479 }
 0x302   :  { %v484_v8 = vmul.f32 0.015625, %v480_v7 }
 0x303   :  { %v497_v12 = vmul.f32 %v485_v6, %v485_v6  ;;  %v503_v43 = vsub.f32 %v988_v26, %v485_v6 }
 0x304   :  { %v493_v9 = vpop.xlane.xlu1 %492  ;;  %v496_v16 = vmul.f32 %v484_v8, %v484_v8  ;;  %v502_v46 = vsub.f32 %v990_v27, %v484_v8 }
 0x305   :  { %v495_v14 = vmul.f32 0.015625, %v493_v9  ;;  %v490_v15 = vpop.xlane.xlu0 %489 }
 0x306   :  { %v494_v17 = vmul.f32 0.015625, %v490_v15  ;;  %v638_v15 = vld [vmem:[%s1107_s8] ss:$0 sm:$0xff] }
 0x307   :  { %v499_v19 = vsub.f32 %v495_v14, %v497_v12 }
 0x308   :  { %v498_v20 = vsub.f32 %v494_v17, %v496_v16  ;;  %v324_v21 = vpop.xlane.xlu1 %323 }
 0x309   :  { %v501_v22 = vmax.f32 %v499_v19, 0.0  ;;  %v326_v23 = vmul.f32 0.015625, %v324_v21  ;;  %v321_v24 = vpop.xlane.xlu0 %320 }
 0x30a   :  { %v500_v25 = vmax.f32 %v498_v20, 0.0  ;;  %v325_v28 = vmul.f32 0.015625, %v321_v24 }
 0x30b   :  { %v505_v29 = vadd.f32 1e-05, %v501_v22  ;;  %v338_v32 = vmul.f32 %v326_v23, %v326_v23  ;;  %v344_v55 = vsub.f32 %v1002_v34, %v326_v23 }
 0x30c   :  { %v504_v30 = vadd.f32 1e-05, %v500_v25  ;;  %v334_v31 = vpop.xlane.xlu1 %333  ;;  %v337_v35 = vmul.f32 %v325_v28, %v325_v28  ;;  %v343_v60 = vsub.f32 %v1005_v13, %v325_v28 }
 0x30d   :  { %809 = vrsqrt.f32 %v505_v29  ;;  %v336_v10 = vmul.f32 0.015625, %v334_v31  ;;  %v331_v33 = vpop.xlane.xlu0 %330 }
 0x30e   :  { %811 = vrsqrt.f32 %v504_v30  ;;  %v335_v36 = vmul.f32 0.015625, %v331_v33 }
 0x30f   :  { %v340_v37 = vsub.f32 %v336_v10, %v338_v32 }
 0x310   :  { %v339_v38 = vsub.f32 %v335_v36, %v337_v35 }
 0x311   :  { %v342_v39 = vmax.f32 %v340_v37, 0.0 }
 0x312   :  { %v341_v40 = vmax.f32 %v339_v38, 0.0 }
 0x313   :  { %v346_v41 = vadd.f32 1e-05, %v342_v39 }
 0x314   :  { %v345_v42 = vadd.f32 1e-05, %v341_v40 }
 0x315   :  { %813 = vrsqrt.f32 %v346_v41 }
 0x316   :  { %815 = vrsqrt.f32 %v345_v42 }
 0x317   :  { %v810_v45 = vpop.eup %809 }
 0x318   :  { %v812_v47 = vpop.eup %811  ;;  %v509_v49 = vmul.f32 %v810_v45, %v503_v43 }
 0x319   :  { %v508_v50 = vmul.f32 %v812_v47, %v502_v46 }
 0x31a   :  { %v515_v51 = vmul.f32 %v513_v44, %v509_v49 }
 0x31b   :  { %v514_v52 = vmul.f32 %v513_v44, %v508_v50 }
 0x31c   :  { %v521_v53 = vadd.f32 %v519_v48, %v515_v51 }
 0x31d   :  { %v520_v54 = vadd.f32 %v519_v48, %v514_v52 }
 0x31e   :  { %v525_v26 = vmul.f32 0.01, %v521_v53  ;;  %vm523_vm5 = vcmp.ge.f32.partialorder %v521_v53, 0.0 }
 0x31f   :  { %v814_v57 = vpop.eup %813  ;;  %vm522_vm4 = vcmp.ge.f32.partialorder %v520_v54, 0.0  ;;  %v524_v27 = vmul.f32 0.01, %v520_v54 }
 0x320   :  { %v816_v61 = vpop.eup %815  ;;  %v350_v62 = vmul.f32 %v814_v57, %v344_v55  ;;  %v527_v34 = vsel %vm523_vm5, %v521_v53, %v525_v26 }
 0x321   :  { %v526_v63 = vsel %vm522_vm4, %v520_v54, %v524_v27  ;;  %v349_v0 = vmul.f32 %v816_v61, %v343_v60 }
 0x322   :  { %745 = vmatprep.mubr.msk.f32.mxu1 %vm158_vm1, %v526_v63  ;;  %v356_v1 = vmul.f32 %v354_v56, %v350_v62 }
 0x323   :  { %746 = vmatmul.mubr.msk.f32.vlgmr.msra.gmra.mrb[2].mxu1 %vm158_vm1, %v527_v34  ;;  %v355_v58 = vmul.f32 %v354_v56, %v349_v0 }
 0x324   :  { %v362_v2 = vadd.f32 %v360_v11, %v356_v1 }
 0x325   :  { %v361_v3 = vadd.f32 %v360_v11, %v355_v58 }
 0x326   :  { %v366_v13 = vmul.f32 0.01, %v362_v2  ;;  %vm364_vm7 = vcmp.ge.f32.partialorder %v362_v2, 0.0 }
 0x327   :  { %vm363_vm6 = vcmp.ge.f32.partialorder %v361_v3, 0.0  ;;  %v365_v4 = vmul.f32 0.01, %v361_v3 }
 0x328   :  { %v368_v59 = vsel %vm364_vm7, %v362_v2, %v366_v13 }
 0x329   :  { %v367_v5 = vsel %vm363_vm6, %v361_v3, %v365_v4 }
 0x32a   :  { %726 = vmatprep.mubr.msk.f32.mxu0 %vm158_vm1, %v367_v5 }
 0x32b   :  { %727 = vmatmul.mubr.msk.f32.vlgmr.msra.gmra.mrb[2].mxu0 %vm158_vm1, %v368_v59 }
 0x3f6   :  { %v747_v6 = vpop.f32.mrb[2].mxu1 }
 0x3f7   :  { %v612_v7 = vadd.f32 %v747_v6, %v641_v18  ;;  %v606_v8 = vpop.f32.mrb[3].mxu1 }
 0x3f8   :  { %v607_v9 = vadd.f32 %v641_v18, %v606_v8 }
 0x3f9   :  { %619 = vrot.lane.b32.xlu1 %v612_v7, %s817_s3 }
 0x3fa   :  { %617 = vrot.lane.b32.xlu0 %v607_v9, %s817_s3 }
 0x3fe   :  { %v728_v12 = vpop.f32.mrb[2].mxu0 }
 0x3ff   :  { %v447_v14 = vpop.f32.mrb[3].mxu0  ;;  %v453_v16 = vadd.f32 %v728_v12, %v638_v15 }
 0x400   :  { %v448_v17 = vadd.f32 %v638_v15, %v447_v14 }
 0x46b   :  { %v620_v19 = vpop.permute.xlu1 %619 }
 0x46c   :  { %v625_v20 = vsel %vm623_vm8, %v453_v16, %v620_v19  ;;  %v618_v21 = vpop.permute.xlu0 %617 }
 0x46d   :  { %627 = vst.msk [vmem:[%s1108_s12 + $0x8] sm:$0xff] %vm54_vm0, %v625_v20  ;;  %v624_v22 = vsel %vm623_vm8, %v448_v17, %v618_v21 }
 0x46e   :  { %626 = vst.msk [vmem:[%s1108_s12] sm:$0xff] %vm54_vm0, %v624_v22 }

</bundles_post_ra>
